<compile_context>
chip_gen: v7x
topology: tpu7x:2x2x1
jax: 0.10.0
libtpu: 0.0.40
codegen_flags: <defaults>
</compile_context>

<pallas_src>
import jax
import jax.numpy as jnp
import numpy as np
from jax.experimental import pallas as pl
from jax.experimental.pallas import tpu as pltpu

BN_EPS = 1e-5
_LOG_EPS = float(np.log(1e-6))   # log of the 1e-6 floor


def _round_up(v, m):
    return (v + m - 1) // m * m


def init_params(key, convf_dim, latent, *, mm_dtype=jnp.bfloat16):
    """Weights stored [in, out]; weight-side feature dims zero-padded to 128.

    The pre-BatchNorm Linear biases of the PyTorch module are omitted on
    purpose: a per-feature bias added immediately before BatchNorm is exactly
    cancelled by the mean subtraction, so the forward output is unchanged.
    BN gamma/beta are randomized (PyTorch default is gamma=1, beta=0) so the
    affine path is actually exercised by the numerical test.
    """
    latent_half = latent // 2
    Lp = _round_up(latent, 128)
    Hp = _round_up(latent_half, 128)
    P = max(Lp, Hp)
    ks = jax.random.split(key, 8)
    s1 = 1.0 / float(np.sqrt(convf_dim))
    s2 = 1.0 / float(np.sqrt(latent))
    s3 = 1.0 / float(np.sqrt(latent_half))

    w1 = jnp.zeros((convf_dim, Lp), jnp.float32).at[:, :latent].set(
        jax.random.uniform(ks[0], (convf_dim, latent), jnp.float32, -s1, s1))
    w2 = jnp.zeros((Lp, Hp), jnp.float32).at[:latent, :latent_half].set(
        jax.random.uniform(ks[1], (latent, latent_half), jnp.float32, -s2, s2))

    # Packed small per-feature params: one (8, P) f32 array -> a single DMA.
    # rows: 0=gamma1, 1=beta1, 2=gamma2, 3=beta2, 4=w3 row, 5..7=pad
    pk = jnp.zeros((8, P), jnp.float32)
    pk = pk.at[0, :latent].set(
        jax.random.uniform(ks[2], (latent,), jnp.float32, 0.5, 1.5))
    pk = pk.at[1, :latent].set(
        0.1 * jax.random.normal(ks[3], (latent,), jnp.float32))
    pk = pk.at[2, :latent_half].set(
        jax.random.uniform(ks[4], (latent_half,), jnp.float32, 0.5, 1.5))
    pk = pk.at[3, :latent_half].set(
        0.1 * jax.random.normal(ks[5], (latent_half,), jnp.float32))
    pk = pk.at[4, :latent_half].set(
        jax.random.uniform(ks[6], (latent_half,), jnp.float32, -s3, s3))
    b3 = jax.random.uniform(ks[7], (1, 1), jnp.float32, -s3, s3)

    return {"w1": w1.astype(mm_dtype), "w2": w2.astype(mm_dtype),
            "pk": pk, "b3": b3}


def scf_head_forward(x, params, *, tile_b=512):
    """x: [B, convf_dim]. params: dict from init_params(). -> [B, 1] f32."""
    # tile_b multiple of 16 keeps dynamic sublane offsets into the bf16 h1
    # scratch aligned to its (16, 128) packing; 512 also matches the v6e/v7x
    # MXU M-cadence and amortizes per-grid-step overhead.
    assert tile_b % 16 == 0, "tile_b must be a multiple of 16"
    B, C = x.shape
    w1, w2, pk, b3 = params["w1"], params["w2"], params["pk"], params["b3"]
    Lp, Hp, P = w1.shape[1], w2.shape[1], pk.shape[1]
    mm_dtype = w1.dtype

    # Cast the dominant HBM stream to the matmul dtype in the wrapper: halves
    # the kernel's x DMA traffic and the double-buffered x-tile VMEM.  It is
    # numerically identical (the kernel rounded x to bf16 before the MXU
    # anyway); ideally the producer already emits bf16 and this is a no-op.
    if x.dtype != mm_dtype:
        x = x.astype(mm_dtype)

    TB = B if B <= tile_b else tile_b          # block == full dim if B is small
    num_tiles = (B + TB - 1) // TB
    B_pad = num_tiles * TB                     # rows >= B are masked in-kernel
    ragged = (B_pad != B)

    def kernel(x_ref, w1_ref, w2_ref, pk_ref, b3_ref, o_ref,
               h1_ref, mean1_ref, m21_ref, mean2_ref, m22_ref):
        j = pl.program_id(0)

        @pl.when(j == 0)
        def _init():
            mean1_ref[...] = jnp.zeros_like(mean1_ref)
            m21_ref[...] = jnp.zeros_like(m21_ref)

        # ---- streaming phase: Linear1 on this batch tile ------------------
        h1 = jnp.dot(x_ref[...], w1_ref[...],
                     preferred_element_type=jnp.float32)            # (TB, Lp) f32
        rows = None
        if ragged:
            rows = jax.lax.broadcasted_iota(jnp.int32, (TB, 1), 0) + j * TB
            h1 = jnp.where(rows < B, h1, 0.0)    # zero padded rows -> exact stats
        row0 = pl.multiple_of(j * TB, TB)
        h1_ref[pl.ds(row0, TB), :] = h1.astype(mm_dtype)   # bf16 resident h1

        # BN1 stats: per-tile centered (Chan/Welford) merge in f32 (robust
        # against the E[x^2]-E[x]^2 cancellation at large B).
        n_b = jnp.minimum(TB, B - j * TB).astype(jnp.float32)
        n_a = (j * TB).astype(jnp.float32)
        tile_mean = jnp.sum(h1, axis=0, keepdims=True) / n_b
        centered = h1 - tile_mean
        if ragged:
            centered = jnp.where(rows < B, centered, 0.0)
        tile_m2 = jnp.sum(centered * centered, axis=0, keepdims=True)
        delta = tile_mean - mean1_ref[...]
        n_ab = n_a + n_b
        mean1_ref[...] = mean1_ref[...] + delta * (n_b / n_ab)
        m21_ref[...] = m21_ref[...] + tile_m2 + (delta * delta) * (n_a * n_b / n_ab)

        # ---- finalize: BN1 + Linear2 + BN2 + Linear3 + stable log ---------
        @pl.when(j == num_tiles - 1)
        def _finalize():
            inv_n = 1.0 / B
            g1, be1 = pk_ref[0:1, :Lp], pk_ref[1:2, :Lp]
            g2, be2 = pk_ref[2:3, :Hp], pk_ref[3:4, :Hp]
            w3_row = pk_ref[4:5, :Hp]
            b3v = b3_ref[0, 0]                      # scalar read from SMEM

            mean1 = mean1_ref[...]
            inv_std1 = jax.lax.rsqrt(m21_ref[...] * inv_n + BN_EPS)

            mean2_ref[...] = jnp.zeros_like(mean2_ref)
            m22_ref[...] = jnp.zeros_like(m22_ref)

            # Pass 1 (tiled): BN1-normalize + ReLU + Linear2; overwrite each
            # h1 tile in place with its h2 tile (Hp <= Lp); stream BN2 stats.
            def pass1(t, carry):
                r0 = pl.multiple_of(t * TB, TB)
                h1t = h1_ref[pl.ds(r0, TB), :].astype(jnp.float32)
                h1n = jnp.maximum(g1 * (h1t - mean1) * inv_std1 + be1, 0.0)
                rws = None
                if ragged:
                    rws = jax.lax.broadcasted_iota(jnp.int32, (TB, 1), 0) + t * TB
                    h1n = jnp.where(rws < B, h1n, 0.0)   # keep BN2 stats exact
                h2t = jnp.dot(h1n.astype(mm_dtype), w2_ref[...],
                              preferred_element_type=jnp.float32)   # (TB, Hp)
                h1_ref[pl.ds(r0, TB), :Hp] = h2t.astype(mm_dtype)

                nb = jnp.minimum(TB, B - t * TB).astype(jnp.float32)
                na = (t * TB).astype(jnp.float32)
                tm = jnp.sum(h2t, axis=0, keepdims=True) / nb
                c = h2t - tm
                if ragged:
                    c = jnp.where(rws < B, c, 0.0)
                tm2 = jnp.sum(c * c, axis=0, keepdims=True)
                d = tm - mean2_ref[...]
                nab = na + nb
                mean2_ref[...] = mean2_ref[...] + d * (nb / nab)
                m22_ref[...] = m22_ref[...] + tm2 + (d * d) * (na * nb / nab)
                return carry

            jax.lax.fori_loop(0, num_tiles, pass1, 0)

            mean2 = mean2_ref[...]
            inv_std2 = jax.lax.rsqrt(m22_ref[...] * inv_n + BN_EPS)

            # Pass 2 (tiled): BN2-normalize + ReLU + 1-wide Linear3 as a VPU
            # multiply + lane reduce (no 1-column MXU pop) + stable log.
            def pass2(t, carry):
                r0 = pl.multiple_of(t * TB, TB)
                h2t = h1_ref[pl.ds(r0, TB), :Hp].astype(jnp.float32)
                h2n = jnp.maximum(g2 * (h2t - mean2) * inv_std2 + be2, 0.0)
                y = jnp.sum(h2n * w3_row, axis=-1, keepdims=True) + b3v
                # log(1e-6 + exp(y)) == max(y,c) + log(1 + exp(-|y-c|)), c=log 1e-6.
                # The inner log argument lies in [1, 2] (well conditioned), so
                # log1p would change nothing beyond f32 eps of the sum.
                m = jnp.maximum(y, _LOG_EPS)
                o_ref[pl.ds(r0, TB), :] = (
                    m + jnp.log(1.0 + jnp.exp(-jnp.abs(y - _LOG_EPS))))
                return carry

            jax.lax.fori_loop(0, num_tiles, pass2, 0)

    # ---- VMEM budget (explicit; clamped to the actual chip) ----------------
    est = (2 * TB * C * 2                       # double-buffered bf16 x tiles
           + (C * Lp + Lp * Hp) * 2             # resident weights, single buffer
           + 8 * P * 4 + 128                    # packed params (+ b3 scalar)
           + B_pad * Lp * 2                     # resident bf16 h1/h2 scratch
           + 2 * (Lp + Hp) * 4                  # BN running mean / M2
           + 2 * B_pad * 4                      # (B_pad, 1) output block
           + 6 * TB * max(Lp, Hp) * 4           # per-tile finalize temporaries
           + (4 << 20))                         # headroom
    try:
        cap = int(0.85 * pltpu.get_tpu_info().vmem_capacity_bytes)
    except Exception:
        cap = 48 << 20                          # safe even for v7x's 64 MiB/TC
    vmem_limit = int(min(cap, max(32 << 20, est)))
    # TODO(synk): for very large B where B_pad*Lp*2 alone blows the budget,
    # spill h1 tiles to an HBM scratch (manual make_async_copy) or recompute
    # h1 from x in the finalize instead of keeping it resident.
    # TODO(synk): on v7x, split the batch across the 2 TensorCores (leading
    # parallel axis / core_map) with a cross-core reduce of the BN stats.

    out = pl.pallas_call(
        kernel,
        out_shape=jax.ShapeDtypeStruct((B_pad, 1), jnp.float32),
        grid_spec=pltpu.PrefetchScalarGridSpec(
            num_scalar_prefetch=0,
            grid=(num_tiles,),
            in_specs=[
                pl.BlockSpec((TB, C), lambda j: (j, 0)),            # streamed x
                pl.BlockSpec(memory_space=pltpu.MemorySpace.VMEM),  # W1 resident
                pl.BlockSpec(memory_space=pltpu.MemorySpace.VMEM),  # W2 resident
                pl.BlockSpec(memory_space=pltpu.MemorySpace.VMEM),  # packed BN/w3
                pl.BlockSpec(memory_space=pltpu.MemorySpace.SMEM),  # b3 scalar
            ],
            out_specs=pl.BlockSpec((B_pad, 1), lambda j: (0, 0)),
            scratch_shapes=[
                pltpu.VMEM((B_pad, Lp), mm_dtype),   # raw h1, reused for h2
                pltpu.VMEM((1, Lp), jnp.float32),    # BN1 running mean
                pltpu.VMEM((1, Lp), jnp.float32),    # BN1 running M2
                pltpu.VMEM((1, Hp), jnp.float32),    # BN2 running mean
                pltpu.VMEM((1, Hp), jnp.float32),    # BN2 running M2
            ]),
        compiler_params=pltpu.CompilerParams(
            dimension_semantics=("arbitrary",),   # sequential: stats/output carry
            vmem_limit_bytes=vmem_limit),
    )(x, w1, w2, pk, b3)
    return out[:B]


def scf_head_reference(x, params):
    """Pure-JAX reference mirroring the PyTorch forward (training-mode BN).

    Mirrors the kernel's precision choices (bf16 matmul inputs, f32 BN stats,
    bf16 storage of h1/h2) so the comparison isolates kernel correctness.
    """
    w1, w2, pk, b3 = params["w1"], params["w2"], params["pk"], params["b3"]
    Lp, Hp = w1.shape[1], w2.shape[1]
    mm_dtype = w1.dtype
    g1, be1 = pk[0:1, :Lp], pk[1:2, :Lp]
    g2, be2 = pk[2:3, :Hp], pk[3:4, :Hp]
    w3 = pk[4:5, :Hp]

    def stats(h):
        m = jnp.mean(h, axis=0, keepdims=True)
        v = jnp.mean((h - m) ** 2, axis=0, keepdims=True)
        return m, v

    h1 = jnp.dot(x.astype(mm_dtype), w1, preferred_element_type=jnp.float32)
    m1, v1 = stats(h1)                                   # stats from f32 h1
    h1q = h1.astype(mm_dtype).astype(jnp.float32)        # kernel stores h1 bf16
    h1n = jnp.maximum(g1 * (h1q - m1) * jax.lax.rsqrt(v1 + BN_EPS) + be1, 0.0)
    h2 = jnp.dot(h1n.astype(mm_dtype), w2, preferred_element_type=jnp.float32)
    m2, v2 = stats(h2)                                   # stats from f32 h2
    h2q = h2.astype(mm_dtype).astype(jnp.float32)        # kernel stores h2 bf16
    h2n = jnp.maximum(g2 * (h2q - m2) * jax.lax.rsqrt(v2 + BN_EPS) + be2, 0.0)
    y = jnp.sum(h2n * w3, axis=-1, keepdims=True) + b3[0, 0]
    return jnp.log(1e-6 + jnp.exp(y))


if __name__ == "__main__":
    # Small shapes; tile_b=16 gives a 3-step batch grid so the streaming-BN
    # accumulation + tiled finalize path is actually exercised.
    B, CONVF_DIM, LATENT = 48, 48, 32

    key = jax.random.PRNGKey(0)
    k_x, k_p, k_x2 = jax.random.split(key, 3)
    params = init_params(k_p, CONVF_DIM, LATENT)

    # Multi-tile, non-ragged batch.
    x = jax.random.normal(k_x, (B, CONVF_DIM), jnp.float32)
    out = jax.block_until_ready(scf_head_forward(x, params, tile_b=16))
    ref = scf_head_reference(x, params)
    assert out.shape == (B, 1)
    np.testing.assert_allclose(np.asarray(out), np.asarray(ref),
                               rtol=5e-3, atol=5e-3)

    # Ragged last tile (B=40 -> B_pad=48) exercises all masking paths.
    B2 = 40
    x2 = jax.random.normal(k_x2, (B2, CONVF_DIM), jnp.float32)
    out2 = jax.block_until_ready(scf_head_forward(x2, params, tile_b=16))
    ref2 = scf_head_reference(x2, params)
    assert out2.shape == (B2, 1)
    np.testing.assert_allclose(np.asarray(out2), np.asarray(ref2),
                               rtol=5e-3, atol=5e-3)

    print("KERNEL_OK")
</pallas_src>

<mosaic_0001>
module attributes {stable_mosaic.version = 11 : i64} {
  func.func @kernel(%arg0: i32, %arg1: memref<16x48xbf16, #tpu.memory_space<vmem>>, %arg2: memref<48x128xbf16, #tpu.memory_space<vmem>>, %arg3: memref<128x128xbf16, #tpu.memory_space<vmem>>, %arg4: memref<8x128xf32, #tpu.memory_space<vmem>>, %arg5: memref<1x1xf32, #tpu.memory_space<smem>>, %arg6: memref<48x1xf32, #tpu.memory_space<vmem>>, %arg7: memref<48x128xbf16, #tpu.memory_space<vmem>>, %arg8: memref<1x128xf32, #tpu.memory_space<vmem>>, %arg9: memref<1x128xf32, #tpu.memory_space<vmem>>, %arg10: memref<1x128xf32, #tpu.memory_space<vmem>>, %arg11: memref<1x128xf32, #tpu.memory_space<vmem>>) attributes {dimension_semantics = [#tpu.dimension_semantics<arbitrary>], iteration_bounds = array<i64: 3>, scalar_prefetch = 0 : i64, scratch_operands = 5 : i64, tpu.core_type = #tpu.core_type<tc>, window_params = [{transform_indices = @transform_0, window_bounds = array<i64: 16, 48>}, {pipeline_mode = #tpu.pipeline_mode<synchronous>, transform_indices = @transform_1, window_bounds = array<i64: 48, 128>}, {pipeline_mode = #tpu.pipeline_mode<synchronous>, transform_indices = @transform_2, window_bounds = array<i64: 128, 128>}, {pipeline_mode = #tpu.pipeline_mode<synchronous>, transform_indices = @transform_3, window_bounds = array<i64: 8, 128>}, {transform_indices = @transform_4, window_bounds = array<i64: 1, 1>}, {pipeline_mode = #tpu.pipeline_mode<synchronous>, transform_indices = @transform_5, window_bounds = array<i64: 48, 1>}]} {
    %c0_i32 = arith.constant 0 : i32
    %0 = arith.cmpi eq, %arg0, %c0_i32 : i32
    %1 = arith.extui %0 : i1 to i32
    %c0_i32_0 = arith.constant 0 : i32
    %2 = arith.cmpi ne, %1, %c0_i32_0 : i32
    scf.if %2 {
      %cst_21 = arith.constant 0.000000e+00 : f32
      %47 = vector.broadcast %cst_21 : f32 to vector<1x128xf32>
      %c0_22 = arith.constant 0 : index
      %c0_23 = arith.constant 0 : index
      %48 = vector.load %arg8[%c0_22, %c0_23] : memref<1x128xf32, #tpu.memory_space<vmem>>, vector<1x128xf32>
      tpu.vector_store %arg8[%c0_22, %c0_23], %47 {strides = array<i32>} : memref<1x128xf32, #tpu.memory_space<vmem>>, vector<1x128xf32>,
      %cst_24 = arith.constant 0.000000e+00 : f32
      %49 = vector.broadcast %cst_24 : f32 to vector<1x128xf32>
      %c0_25 = arith.constant 0 : index
      %c0_26 = arith.constant 0 : index
      %50 = vector.load %arg9[%c0_25, %c0_26] : memref<1x128xf32, #tpu.memory_space<vmem>>, vector<1x128xf32>
      tpu.vector_store %arg9[%c0_25, %c0_26], %49 {strides = array<i32>} : memref<1x128xf32, #tpu.memory_space<vmem>>, vector<1x128xf32>,
    } else {
    }
    %c0 = arith.constant 0 : index
    %c0_1 = arith.constant 0 : index
    %3 = vector.load %arg1[%c0, %c0_1] : memref<16x48xbf16, #tpu.memory_space<vmem>>, vector<16x48xbf16>
    %c0_2 = arith.constant 0 : index
    %c0_3 = arith.constant 0 : index
    %4 = vector.load %arg2[%c0_2, %c0_3] : memref<48x128xbf16, #tpu.memory_space<vmem>>, vector<48x128xbf16>
    %cst = arith.constant dense<0.000000e+00> : vector<16x128xf32>
    %5 = tpu.matmul %3, %4, %cst {dimension_numbers = #tpu.dot_dimension_numbers<[1], [0], [0], [1], [0, 0, 1, 1], [], []>} : vector<16x48xbf16>, vector<48x128xbf16>, vector<16x128xf32> -> vector<16x128xf32>
    %c16_i32 = arith.constant 16 : i32
    %6 = arith.muli %arg0, %c16_i32 : i32
    %7 = tpu.assume_multiple %6, 16 : i32
    %8 = arith.truncf %5 : vector<16x128xf32> to vector<16x128xbf16>
    %9 = arith.index_cast %7 : i32 to index
    %c0_4 = arith.constant 0 : index
    %10 = vector.load %arg7[%9, %c0_4] : memref<48x128xbf16, #tpu.memory_space<vmem>>, vector<16x128xbf16>
    tpu.vector_store %arg7[%9, %c0_4], %8 {strides = array<i32>} : memref<48x128xbf16, #tpu.memory_space<vmem>>, vector<16x128xbf16>,
    %c16_i32_5 = arith.constant 16 : i32
    %11 = arith.muli %arg0, %c16_i32_5 : i32
    %c48_i32 = arith.constant 48 : i32
    %12 = arith.subi %c48_i32, %11 : i32
    %c16_i32_6 = arith.constant 16 : i32
    %13 = arith.minsi %c16_i32_6, %12 : i32
    %14 = arith.sitofp %13 : i32 to f32
    %c16_i32_7 = arith.constant 16 : i32
    %15 = arith.muli %arg0, %c16_i32_7 : i32
    %16 = arith.sitofp %15 : i32 to f32
    %cst_8 = arith.constant dense<0.000000e+00> : vector<128xf32>
    %17 = vector.multi_reduction <add>, %5, %cst_8 [0] : vector<16x128xf32> to vector<128xf32>
    %18 = vector.shape_cast %17 : vector<128xf32> to vector<1x128xf32>
    %19 = vector.broadcast %14 : f32 to vector<1x128xf32>
    %20 = arith.divf %18, %19 : vector<1x128xf32>
    %21 = vector.broadcast %20 : vector<1x128xf32> to vector<16x128xf32>
    %22 = arith.subf %5, %21 : vector<16x128xf32>
    %23 = arith.mulf %22, %22 : vector<16x128xf32>
    %cst_9 = arith.constant dense<0.000000e+00> : vector<128xf32>
    %24 = vector.multi_reduction <add>, %23, %cst_9 [0] : vector<16x128xf32> to vector<128xf32>
    %25 = vector.shape_cast %24 : vector<128xf32> to vector<1x128xf32>
    %c0_10 = arith.constant 0 : index
    %c0_11 = arith.constant 0 : index
    %26 = vector.load %arg8[%c0_10, %c0_11] : memref<1x128xf32, #tpu.memory_space<vmem>>, vector<1x128xf32>
    %27 = arith.subf %20, %26 : vector<1x128xf32>
    %28 = arith.addf %16, %14 : f32
    %c0_12 = arith.constant 0 : index
    %c0_13 = arith.constant 0 : index
    %29 = vector.load %arg8[%c0_12, %c0_13] : memref<1x128xf32, #tpu.memory_space<vmem>>, vector<1x128xf32>
    %30 = arith.divf %14, %28 : f32
    %31 = vector.broadcast %30 : f32 to vector<1x128xf32>
    %32 = arith.mulf %27, %31 : vector<1x128xf32>
    %33 = arith.addf %29, %32 : vector<1x128xf32>
    %c0_14 = arith.constant 0 : index
    %c0_15 = arith.constant 0 : index
    %34 = vector.load %arg8[%c0_14, %c0_15] : memref<1x128xf32, #tpu.memory_space<vmem>>, vector<1x128xf32>
    tpu.vector_store %arg8[%c0_14, %c0_15], %33 {strides = array<i32>} : memref<1x128xf32, #tpu.memory_space<vmem>>, vector<1x128xf32>,
    %c0_16 = arith.constant 0 : index
    %c0_17 = arith.constant 0 : index
    %35 = vector.load %arg9[%c0_16, %c0_17] : memref<1x128xf32, #tpu.memory_space<vmem>>, vector<1x128xf32>
    %36 = arith.addf %35, %25 : vector<1x128xf32>
    %37 = arith.mulf %27, %27 : vector<1x128xf32>
    %38 = arith.mulf %16, %14 : f32
    %39 = arith.divf %38, %28 : f32
    %40 = vector.broadcast %39 : f32 to vector<1x128xf32>
    %41 = arith.mulf %37, %40 : vector<1x128xf32>
    %42 = arith.addf %36, %41 : vector<1x128xf32>
    %c0_18 = arith.constant 0 : index
    %c0_19 = arith.constant 0 : index
    %43 = vector.load %arg9[%c0_18, %c0_19] : memref<1x128xf32, #tpu.memory_space<vmem>>, vector<1x128xf32>
    tpu.vector_store %arg9[%c0_18, %c0_19], %42 {strides = array<i32>} : memref<1x128xf32, #tpu.memory_space<vmem>>, vector<1x128xf32>,
    %c2_i32 = arith.constant 2 : i32
    %44 = arith.cmpi eq, %arg0, %c2_i32 : i32
    %45 = arith.extui %44 : i1 to i32
    %c0_i32_20 = arith.constant 0 : i32
    %46 = arith.cmpi ne, %45, %c0_i32_20 : i32
    scf.if %46 {
      %c0_21 = arith.constant 0 : index
      %c0_22 = arith.constant 0 : index
      %47 = vector.load %arg4[%c0_21, %c0_22] : memref<8x128xf32, #tpu.memory_space<vmem>>, vector<1x128xf32>
      %c1 = arith.constant 1 : index
      %c0_23 = arith.constant 0 : index
      %48 = vector.load %arg4[%c1, %c0_23] : memref<8x128xf32, #tpu.memory_space<vmem>>, vector<1x128xf32>
      %c2 = arith.constant 2 : index
      %c0_24 = arith.constant 0 : index
      %49 = vector.load %arg4[%c2, %c0_24] : memref<8x128xf32, #tpu.memory_space<vmem>>, vector<1x128xf32>
      %c3 = arith.constant 3 : index
      %c0_25 = arith.constant 0 : index
      %50 = vector.load %arg4[%c3, %c0_25] : memref<8x128xf32, #tpu.memory_space<vmem>>, vector<1x128xf32>
      %c4 = arith.constant 4 : index
      %c0_26 = arith.constant 0 : index
      %51 = vector.load %arg4[%c4, %c0_26] : memref<8x128xf32, #tpu.memory_space<vmem>>, vector<1x128xf32>
      %c0_27 = arith.constant 0 : index
      %c0_28 = arith.constant 0 : index
      %52 = memref.load %arg5[%c0_27, %c0_28] : memref<1x1xf32, #tpu.memory_space<smem>>
      %c0_29 = arith.constant 0 : index
      %c0_30 = arith.constant 0 : index
      %53 = vector.load %arg8[%c0_29, %c0_30] : memref<1x128xf32, #tpu.memory_space<vmem>>, vector<1x128xf32>
      %c0_31 = arith.constant 0 : index
      %c0_32 = arith.constant 0 : index
      %54 = vector.load %arg9[%c0_31, %c0_32] : memref<1x128xf32, #tpu.memory_space<vmem>>, vector<1x128xf32>
      %cst_33 = arith.constant 0.020833334 : f32
      %55 = vector.broadcast %cst_33 : f32 to vector<1x128xf32>
      %56 = arith.mulf %54, %55 : vector<1x128xf32>
      %cst_34 = arith.constant 9.99999974E-6 : f32
      %57 = vector.broadcast %cst_34 : f32 to vector<1x128xf32>
      %58 = arith.addf %56, %57 : vector<1x128xf32>
      %59 = math.rsqrt %58 : vector<1x128xf32>
      %cst_35 = arith.constant 0.000000e+00 : f32
      %60 = vector.broadcast %cst_35 : f32 to vector<1x128xf32>
      %c0_36 = arith.constant 0 : index
      %c0_37 = arith.constant 0 : index
      %61 = vector.load %arg10[%c0_36, %c0_37] : memref<1x128xf32, #tpu.memory_space<vmem>>, vector<1x128xf32>
      tpu.vector_store %arg10[%c0_36, %c0_37], %60 {strides = array<i32>} : memref<1x128xf32, #tpu.memory_space<vmem>>, vector<1x128xf32>,
      %cst_38 = arith.constant 0.000000e+00 : f32
      %62 = vector.broadcast %cst_38 : f32 to vector<1x128xf32>
      %c0_39 = arith.constant 0 : index
      %c0_40 = arith.constant 0 : index
      %63 = vector.load %arg11[%c0_39, %c0_40] : memref<1x128xf32, #tpu.memory_space<vmem>>, vector<1x128xf32>
      tpu.vector_store %arg11[%c0_39, %c0_40], %62 {strides = array<i32>} : memref<1x128xf32, #tpu.memory_space<vmem>>, vector<1x128xf32>,
      %c0_i32_41 = arith.constant 0 : i32
      %c3_i32 = arith.constant 3 : i32
      %64 = arith.addi %c0_i32_41, %c3_i32 : i32
      %c1_i32 = arith.constant 1 : i32
      scf.for %arg12 = %c0_i32_41 to %64 step %c1_i32  : i32 {
        %c16_i32_53 = arith.constant 16 : i32
        %73 = arith.muli %arg12, %c16_i32_53 : i32
        %74 = tpu.assume_multiple %73, 16 : i32
        %75 = arith.index_cast %74 : i32 to index
        %c0_54 = arith.constant 0 : index
        %76 = vector.load %arg7[%75, %c0_54] : memref<48x128xbf16, #tpu.memory_space<vmem>>, vector<16x128xbf16>
        %77 = arith.extf %76 : vector<16x128xbf16> to vector<16x128xf32>
        %78 = vector.broadcast %53 : vector<1x128xf32> to vector<16x128xf32>
        %79 = arith.subf %77, %78 : vector<16x128xf32>
        %80 = vector.broadcast %47 : vector<1x128xf32> to vector<16x128xf32>
        %81 = arith.mulf %80, %79 : vector<16x128xf32>
        %82 = vector.broadcast %59 : vector<1x128xf32> to vector<16x128xf32>
        %83 = arith.mulf %81, %82 : vector<16x128xf32>
        %84 = vector.broadcast %48 : vector<1x128xf32> to vector<16x128xf32>
        %85 = arith.addf %83, %84 : vector<16x128xf32>
        %cst_55 = arith.constant 0.000000e+00 : f32
        %86 = vector.broadcast %cst_55 : f32 to vector<16x128xf32>
        %87 = arith.maximumf %85, %86 : vector<16x128xf32>
        %88 = arith.truncf %87 : vector<16x128xf32> to vector<16x128xbf16>
        %c0_56 = arith.constant 0 : index
        %c0_57 = arith.constant 0 : index
        %89 = vector.load %arg3[%c0_56, %c0_57] : memref<128x128xbf16, #tpu.memory_space<vmem>>, vector<128x128xbf16>
        %cst_58 = arith.constant dense<0.000000e+00> : vector<16x128xf32>
        %90 = tpu.matmul %88, %89, %cst_58 {dimension_numbers = #tpu.dot_dimension_numbers<[1], [0], [0], [1], [0, 0, 1, 1], [], []>} : vector<16x128xbf16>, vector<128x128xbf16>, vector<16x128xf32> -> vector<16x128xf32>
        %91 = arith.truncf %90 : vector<16x128xf32> to vector<16x128xbf16>
        %92 = arith.index_cast %74 : i32 to index
        %c0_59 = arith.constant 0 : index
        %93 = vector.load %arg7[%92, %c0_59] : memref<48x128xbf16, #tpu.memory_space<vmem>>, vector<16x128xbf16>
        tpu.vector_store %arg7[%92, %c0_59], %91 {strides = array<i32>} : memref<48x128xbf16, #tpu.memory_space<vmem>>, vector<16x128xbf16>,
        %c16_i32_60 = arith.constant 16 : i32
        %94 = arith.muli %arg12, %c16_i32_60 : i32
        %c48_i32_61 = arith.constant 48 : i32
        %95 = arith.subi %c48_i32_61, %94 : i32
        %c16_i32_62 = arith.constant 16 : i32
        %96 = arith.minsi %c16_i32_62, %95 : i32
        %97 = arith.sitofp %96 : i32 to f32
        %c16_i32_63 = arith.constant 16 : i32
        %98 = arith.muli %arg12, %c16_i32_63 : i32
        %99 = arith.sitofp %98 : i32 to f32
        %cst_64 = arith.constant dense<0.000000e+00> : vector<128xf32>
        %100 = vector.multi_reduction <add>, %90, %cst_64 [0] : vector<16x128xf32> to vector<128xf32>
        %101 = vector.shape_cast %100 : vector<128xf32> to vector<1x128xf32>
        %102 = vector.broadcast %97 : f32 to vector<1x128xf32>
        %103 = arith.divf %101, %102 : vector<1x128xf32>
        %104 = vector.broadcast %103 : vector<1x128xf32> to vector<16x128xf32>
        %105 = arith.subf %90, %104 : vector<16x128xf32>
        %106 = arith.mulf %105, %105 : vector<16x128xf32>
        %cst_65 = arith.constant dense<0.000000e+00> : vector<128xf32>
        %107 = vector.multi_reduction <add>, %106, %cst_65 [0] : vector<16x128xf32> to vector<128xf32>
        %108 = vector.shape_cast %107 : vector<128xf32> to vector<1x128xf32>
        %c0_66 = arith.constant 0 : index
        %c0_67 = arith.constant 0 : index
        %109 = vector.load %arg10[%c0_66, %c0_67] : memref<1x128xf32, #tpu.memory_space<vmem>>, vector<1x128xf32>
        %110 = arith.subf %103, %109 : vector<1x128xf32>
        %111 = arith.addf %99, %97 : f32
        %c0_68 = arith.constant 0 : index
        %c0_69 = arith.constant 0 : index
        %112 = vector.load %arg10[%c0_68, %c0_69] : memref<1x128xf32, #tpu.memory_space<vmem>>, vector<1x128xf32>
        %113 = arith.divf %97, %111 : f32
        %114 = vector.broadcast %113 : f32 to vector<1x128xf32>
        %115 = arith.mulf %110, %114 : vector<1x128xf32>
        %116 = arith.addf %112, %115 : vector<1x128xf32>
        %c0_70 = arith.constant 0 : index
        %c0_71 = arith.constant 0 : index
        %117 = vector.load %arg10[%c0_70, %c0_71] : memref<1x128xf32, #tpu.memory_space<vmem>>, vector<1x128xf32>
        tpu.vector_store %arg10[%c0_70, %c0_71], %116 {strides = array<i32>} : memref<1x128xf32, #tpu.memory_space<vmem>>, vector<1x128xf32>,
        %c0_72 = arith.constant 0 : index
        %c0_73 = arith.constant 0 : index
        %118 = vector.load %arg11[%c0_72, %c0_73] : memref<1x128xf32, #tpu.memory_space<vmem>>, vector<1x128xf32>
        %119 = arith.addf %118, %108 : vector<1x128xf32>
        %120 = arith.mulf %110, %110 : vector<1x128xf32>
        %121 = arith.mulf %99, %97 : f32
        %122 = arith.divf %121, %111 : f32
        %123 = vector.broadcast %122 : f32 to vector<1x128xf32>
        %124 = arith.mulf %120, %123 : vector<1x128xf32>
        %125 = arith.addf %119, %124 : vector<1x128xf32>
        %c0_74 = arith.constant 0 : index
        %c0_75 = arith.constant 0 : index
        %126 = vector.load %arg11[%c0_74, %c0_75] : memref<1x128xf32, #tpu.memory_space<vmem>>, vector<1x128xf32>
        tpu.vector_store %arg11[%c0_74, %c0_75], %125 {strides = array<i32>} : memref<1x128xf32, #tpu.memory_space<vmem>>, vector<1x128xf32>,
      }
      %c3_i32_42 = arith.constant 3 : i32
      %c0_43 = arith.constant 0 : index
      %c0_44 = arith.constant 0 : index
      %65 = vector.load %arg10[%c0_43, %c0_44] : memref<1x128xf32, #tpu.memory_space<vmem>>, vector<1x128xf32>
      %c0_45 = arith.constant 0 : index
      %c0_46 = arith.constant 0 : index
      %66 = vector.load %arg11[%c0_45, %c0_46] : memref<1x128xf32, #tpu.memory_space<vmem>>, vector<1x128xf32>
      %cst_47 = arith.constant 0.020833334 : f32
      %67 = vector.broadcast %cst_47 : f32 to vector<1x128xf32>
      %68 = arith.mulf %66, %67 : vector<1x128xf32>
      %cst_48 = arith.constant 9.99999974E-6 : f32
      %69 = vector.broadcast %cst_48 : f32 to vector<1x128xf32>
      %70 = arith.addf %68, %69 : vector<1x128xf32>
      %71 = math.rsqrt %70 : vector<1x128xf32>
      %c0_i32_49 = arith.constant 0 : i32
      %c3_i32_50 = arith.constant 3 : i32
      %72 = arith.addi %c0_i32_49, %c3_i32_50 : i32
      %c1_i32_51 = arith.constant 1 : i32
      scf.for %arg12 = %c0_i32_49 to %72 step %c1_i32_51  : i32 {
        %c16_i32_53 = arith.constant 16 : i32
        %73 = arith.muli %arg12, %c16_i32_53 : i32
        %74 = tpu.assume_multiple %73, 16 : i32
        %75 = arith.index_cast %74 : i32 to index
        %c0_54 = arith.constant 0 : index
        %76 = vector.load %arg7[%75, %c0_54] : memref<48x128xbf16, #tpu.memory_space<vmem>>, vector<16x128xbf16>
        %77 = arith.extf %76 : vector<16x128xbf16> to vector<16x128xf32>
        %78 = vector.broadcast %65 : vector<1x128xf32> to vector<16x128xf32>
        %79 = arith.subf %77, %78 : vector<16x128xf32>
        %80 = vector.broadcast %49 : vector<1x128xf32> to vector<16x128xf32>
        %81 = arith.mulf %80, %79 : vector<16x128xf32>
        %82 = vector.broadcast %71 : vector<1x128xf32> to vector<16x128xf32>
        %83 = arith.mulf %81, %82 : vector<16x128xf32>
        %84 = vector.broadcast %50 : vector<1x128xf32> to vector<16x128xf32>
        %85 = arith.addf %83, %84 : vector<16x128xf32>
        %cst_55 = arith.constant 0.000000e+00 : f32
        %86 = vector.broadcast %cst_55 : f32 to vector<16x128xf32>
        %87 = arith.maximumf %85, %86 : vector<16x128xf32>
        %88 = vector.broadcast %51 : vector<1x128xf32> to vector<16x128xf32>
        %89 = arith.mulf %87, %88 : vector<16x128xf32>
        %cst_56 = arith.constant dense<0.000000e+00> : vector<16xf32>
        %90 = vector.multi_reduction <add>, %89, %cst_56 [1] : vector<16x128xf32> to vector<16xf32>
        %91 = vector.shape_cast %90 : vector<16xf32> to vector<16x1xf32>
        %92 = vector.broadcast %52 : f32 to vector<16x1xf32>
        %93 = arith.addf %91, %92 : vector<16x1xf32>
        %cst_57 = arith.constant -13.8155107 : f32
        %94 = vector.broadcast %cst_57 : f32 to vector<16x1xf32>
        %95 = arith.maximumf %93, %94 : vector<16x1xf32>
        %cst_58 = arith.constant -13.8155107 : f32
        %96 = vector.broadcast %cst_58 : f32 to vector<16x1xf32>
        %97 = arith.subf %93, %96 : vector<16x1xf32>
        %98 = math.absf %97 : vector<16x1xf32>
        %cst_59 = arith.constant 0.000000e+00 : f32
        %99 = vector.broadcast %cst_59 : f32 to vector<16x1xf32>
        %100 = arith.subf %99, %98 : vector<16x1xf32>
        %101 = math.exp %100 : vector<16x1xf32>
        %cst_60 = arith.constant 1.000000e+00 : f32
        %102 = vector.broadcast %cst_60 : f32 to vector<16x1xf32>
        %103 = arith.addf %102, %101 : vector<16x1xf32>
        %104 = math.log %103 : vector<16x1xf32>
        %105 = arith.addf %95, %104 : vector<16x1xf32>
        %106 = arith.index_cast %74 : i32 to index
        %c0_61 = arith.constant 0 : index
        %107 = vector.load %arg6[%106, %c0_61] : memref<48x1xf32, #tpu.memory_space<vmem>>, vector<16x1xf32>
        tpu.vector_store %arg6[%106, %c0_61], %105 {strides = array<i32>} : memref<48x1xf32, #tpu.memory_space<vmem>>, vector<16x1xf32>,
      }
      %c3_i32_52 = arith.constant 3 : i32
    } else {
    }
    return
  }
  func.func @transform_0(%arg0: i32) -> (i32, i32) {
    %c0_i32 = arith.constant 0 : i32
    %c0_i32_0 = arith.constant 0 : i32
    return %arg0, %c0_i32 : i32, i32
  }
  func.func @transform_1(%arg0: i32) -> (i32, i32) {
    %c0_i32 = arith.constant 0 : i32
    %c0_i32_0 = arith.constant 0 : i32
    %c0_i32_1 = arith.constant 0 : i32
    return %c0_i32, %c0_i32_0 : i32, i32
  }
  func.func @transform_2(%arg0: i32) -> (i32, i32) {
    %c0_i32 = arith.constant 0 : i32
    %c0_i32_0 = arith.constant 0 : i32
    %c0_i32_1 = arith.constant 0 : i32
    return %c0_i32, %c0_i32_0 : i32, i32
  }
  func.func @transform_3(%arg0: i32) -> (i32, i32) {
    %c0_i32 = arith.constant 0 : i32
    %c0_i32_0 = arith.constant 0 : i32
    %c0_i32_1 = arith.constant 0 : i32
    return %c0_i32, %c0_i32_0 : i32, i32
  }
  func.func @transform_4(%arg0: i32) -> (i32, i32) {
    %c0_i32 = arith.constant 0 : i32
    %c0_i32_0 = arith.constant 0 : i32
    %c0_i32_1 = arith.constant 0 : i32
    return %c0_i32, %c0_i32_0 : i32, i32
  }
  func.func @transform_5(%arg0: i32) -> (i32, i32) {
    %c0_i32 = arith.constant 0 : i32
    %c0_i32_0 = arith.constant 0 : i32
    %c0_i32_1 = arith.constant 0 : i32
    return %c0_i32, %c0_i32_0 : i32, i32
  }
}

</mosaic_0001>

<bundles_post_ra>
// kernel: tpu_custom_call.1
= control target key start
LH: loop header
LB: loop body
LE: loop exit
PB: predicated region body
PF: predicated region fallthrough
CT: control target
= control target key end

     0   :  { %s1479_s0 = inlined_call_operand.hbm [shape: bf16[48,48], index: 0, kind: input, shape index: {}]   ;;  %s1480_s1 = inlined_call_operand.hbm [shape: bf16[48,128], index: 1, kind: input, shape index: {}]   ;;  %s1481_s2 = inlined_call_operand.hbm [shape: bf16[128,128], index: 2, kind: input, shape index: {}]   ;;  %s1482_s3 = inlined_call_operand.vmem [shape: f32[8,128], index: 3, kind: input, shape index: {}]   ;;  %s1483_s4 = inlined_call_operand.<no memory space> [shape: f32[1,1], index: 4, kind: input, shape index: {}]   ;;  %s1484_s5 = inlined_call_operand.vmem [shape: f32[48,1], index: 5, kind: output, shape index: {}]  }
   0x1   :  { %10 = sst [smem:[#allocation7]] %s1483_s4 }
   0x2   :  { %11 = vsyncpa [#allocation9], 0 }
   0x3   :  { %13 = vsyncpa [#allocation9 + $0x1], 0 }
   0x4   :  { %14 = vsyncpa [#allocation11], 0  ;;  %s1174_s20 = smov 0   ;;  %s1176_s21 = smov 0  }
   0x5   :  { %s1178_s22 = smov 0   ;;  %s1180_s23 = smov 0  }
   0x6 LB: > { %s1193_s4 = sadd.s32 4294967295, %s1120_s23   ;;  %p40_p0 = scmp.ne.s32.totalorder %s1112_s21, %s1108_s20  ;;  %s1120_s23 = sphi %s1180_s23, %s1500_s23   ;;  %s1116_s22 = sphi %s1178_s22, %s1499_s22   ;;  %s1112_s21 = sphi %s1176_s21, %s1498_s21   ;;  %s1108_s20 = sphi %s1174_s20, %s1497_s20  }
   0x7   : > { %p1485_p1 = scmp.eq.s32.totalorder %s1193_s4, 0  ;;  %p781_p2 = scmp.ge.s32.totalorder %s1120_s23, 1 }
   0x8   : > { %p156_p3 = scmp.lt.s32.totalorder %s1120_s23, 4  ;;  %s1130_s26 = smov [#allocation10]  }
   0x9   : > { %p1202_p5 = por %p1485_p1, %p40_p0  ;;  %s168_s27 = sshll.u32 %s1130_s26, 4  ;;  %s169_s27 = int_to_ptr.vmem [resolvable:$true] %s168_s27 }
   0xa   : > { %p1206_p6 = pnand %p781_p2, %p156_p3  ;;  %s1131_s29 = smov [#allocation12]  }
   0xb   : > { %s1488_s24 = scalar_select %p1202_p5, 1, 0 }
   0xc   : > { %s1489_s25 = scalar_select %p1206_p6, 1, 0 }
   0xd   : > { %p882_p7 = pneg %p1206_p6  ;;  %s181_s30 = sshll.u32 %s1131_s29, 4  ;;  %s1218_s30 = int_to_ptr.vmem [resolvable:$true] %s181_s30 }
   0xe   : > { %s988_s8 = scalar_lea.hbm %s1480_s1, 384 }
   0xf   : > { %p1214_p8 = pnand %p882_p7, %p1485_p1  ;;  %p989_p9 = scmp.ne.s32.totalorder %s1480_s1, %s988_s8 }
  0x10   : > { %p995_p13 = scmp.lt.u32.totalorder %s988_s8, %s1480_s1 }
  0x11   : > { %p990_p10 = pneg %p1214_p8 }
  0x13   : > { %p991_p11 = pnand %p990_p10, %p989_p9 }
  0x15   : > { %p992_p12 = pneg %p991_p11 }
  0x17   : > { %p997_p0 = pnand %p995_p13, %p992_p12 }
  0x19   : > { %1000 = shalt.err (!%p997_p0)
}
  0x1a   : > { %s1001_s13 = scalar_lea.vmem %s169_s27, 384  ;;  %p1009_p4 = scmp.lt.s32.totalorder %s169_s27, %s169_s27 }
  0x1b   : > { %p1002_p2 = scmp.ne.s32.totalorder %s169_s27, %s1001_s13  ;;  %p1010_p1 = scmp.lt.s32.totalorder %s1001_s13, %s1001_s13 }
  0x1d   : > { %p1004_p3 = pnand %p1002_p2, %p990_p10  ;;  %p1011_p5 = por %p1010_p1, %p1009_p4 }
  0x1f   : > { %p1005_p7 = pneg %p1004_p3 }
  0x21   : > { %p1012_p6 = pnand %p1011_p5, %p1005_p7 }
  0x23   : > { %1015 = shalt.err (!%p1012_p6)
}
  0x24   : > { %s1132_s14 = smov 64   ;;  %s1133_s15 = smov 4  }
  0x25   : > { %885 = dma.hbm_to_vmem [thread:$0]  (!%p1214_p8), %s1480_s1, 384, %s169_s27, [#allocation11], %s1132_s14, %s1132_s14, %s1133_s15  }
  0x26   : > { %s1016_s20 = scalar_lea.hbm %s1481_s2, 1024 }
  0x27   : > { %p1017_p1 = scmp.ne.s32.totalorder %s1481_s2, %s1016_s20  ;;  %p1023_p6 = scmp.lt.u32.totalorder %s1016_s20, %s1481_s2 }
  0x29   : > { %p1019_p4 = pnand %p1017_p1, %p990_p10 }
  0x2b   : > { %p1020_p5 = pneg %p1019_p4 }
  0x2d   : > { %p1025_p9 = pnand %p1023_p6, %p1020_p5 }
  0x2f   : > { %1028 = shalt.err (!%p1025_p9)
}
  0x30   : > { %s1029_s27 = scalar_lea.vmem %s1218_s30, 1024  ;;  %p1037_p0 = scmp.lt.s32.totalorder %s1218_s30, %s1218_s30 }
  0x31   : > { %p1030_p11 = scmp.ne.s32.totalorder %s1218_s30, %s1029_s27  ;;  %p1038_p2 = scmp.lt.s32.totalorder %s1029_s27, %s1029_s27 }
  0x33   : > { %p1032_p12 = pnand %p1030_p11, %p990_p10  ;;  %p1039_p3 = por %p1038_p2, %p1037_p0 }
  0x35   : > { %p1033_p13 = pneg %p1032_p12 }
  0x37   : > { %p1040_p7 = pnand %p1039_p3, %p1033_p13 }
  0x39   : > { %1043 = shalt.err (!%p1040_p7)
}
  0x3a   : > { %888 = dma.hbm_to_vmem [thread:$0]  (!%p1214_p8), %s1481_s2, 1024, %s1218_s30, [#allocation11], %s1132_s14, %s1132_s14, %s1133_s15  }
  0x3b   : > { %s1274_s10 = sadd.s32 1, %s1120_s23   ;;  %s27_s28 = sadd.s32 1, %s1116_s22 }
  0x3c   : > { %s24_s11 = ssub.s32 %s1120_s23, %s1274_s10  ;;  %p34_p10 = scmp.ne.s32.totalorder %s1116_s22, %s1112_s21 }
  0x3d   : > { %p25_p1 = scmp.eq.s32.totalorder %s24_s11, 0  ;;  %p35_p4 = scmp.eq.s32.totalorder %s1120_s23, 0 }
  0x3e   : > { %p895_p5 = scmp.lt.s32.totalorder %s1120_s23, 3  ;;  %s201_s12 = sand.u32 1, %s1116_s22  }
  0x3f   : > { %s1285_s13 = scalar_select %p25_p1, %s1116_s22, %s27_s28  }
  0x40   : > { %p36_p6 = por %p35_p4, %p34_p10  ;;  %s785_s16 = sshll.u32 %s201_s12, 3 }
  0x41   : > { %s824_s17 = sshll.u32 %s1120_s23, 7  ;;  %s205_s30 = scalar_lea.vmem [#allocation8], %s785_s16 }
  0x42   : > { %s1291_s20 = scalar_lea.hbm %s1479_s0, %s824_s17  ;;  %s212_s26 = sshll.u32 %s205_s30, 4  ;;  %s1297_s26 = int_to_ptr.vmem [resolvable:$true] %s212_s26 }
  0x43   : > { %p1293_p8 = pnand %p895_p5, %p36_p6  ;;  %s1299_s23 = scalar_lea.sflag [#allocation9], %s201_s12 }
  0x44   : > { %s1044_s6 = scalar_lea.hbm %s1291_s20, 128  ;;  %s1049_s8 = scalar_lea.hbm %s1479_s0, 384 }
  0x45   : > { %p1045_p9 = scmp.ne.s32.totalorder %s1291_s20, %s1044_s6  ;;  %p1046_p11 = pneg %p1293_p8 }
  0x46   : > { %p1050_p0 = scmp.lt.u32.totalorder %s1291_s20, %s1479_s0  ;;  %p1051_p2 = scmp.lt.u32.totalorder %s1049_s8, %s1044_s6 }
  0x47   : > { %p1047_p12 = pnand %p1046_p11, %p1045_p9  ;;  %p1053_p7 = scmp.lt.u32.totalorder %s1044_s6, %s1291_s20 }
  0x48   : > { %p1052_p3 = por %p1051_p2, %p1050_p0 }
  0x49   : > { %p1048_p13 = pneg %p1047_p12 }
  0x4a   : > { %p1054_p10 = por %p1053_p7, %p1052_p3 }
  0x4c   : > { %p1055_p1 = pnand %p1054_p10, %p1048_p13 }
  0x4e   : > { %1058 = shalt.err (!%p1055_p1)
}
  0x4f   : > { %s1059_s11 = scalar_lea.vmem %s1297_s26, 128  ;;  %s1134_s12 = smov [#allocation8]  }
  0x50   : > { %p1060_p4 = scmp.ne.s32.totalorder %s1297_s26, %s1059_s11  ;;  %s1064_s16 = sshll.u32 %s1134_s12, 4  ;;  %s1065_s16 = int_to_ptr.vmem [resolvable:$false] %s1064_s16 }
  0x51   : > { %s1066_s17 = scalar_lea.vmem %s1065_s16, 256  ;;  %p1067_p9 = scmp.lt.s32.totalorder %s1297_s26, %s1065_s16 }
  0x52   : > { %p1062_p5 = pnand %p1060_p4, %p1046_p11  ;;  %p1068_p12 = scmp.lt.s32.totalorder %s1066_s17, %s1059_s11 }
  0x54   : > { %p1063_p6 = pneg %p1062_p5  ;;  %p1069_p0 = por %p1068_p12, %p1067_p9 }
  0x56   : > { %p1070_p2 = pnand %p1069_p0, %p1063_p6 }
  0x58   : > { %1073 = shalt.err (!%p1070_p2)
}
  0x59   : > { %892 = dma.hbm_to_vmem [thread:$0]  (!%p1293_p8), %s1291_s20, 128, %s1297_s26, %s1299_s23, %s1132_s14, %s1132_s14, %s1133_s15  }
  0x5a   : > { %p1492_p11 = scmp.ne.s32.totalorder %s1489_s25, 0 }
  0x5b   : > { %s226_s18 = sand.u32 (!%p1492_p11), 1, %s1112_s21   ;;  %p1493_p13 = scmp.ne.s32.totalorder (!%p1492_p11), %s1488_s24, 0 }
  0x5c   : > { %224 = sbr.rel (%p1492_p11) target bundleno = 912 (0x390), region = 40  ;;  %s789_s19 = sshll.u32 (!%p1492_p11), %s226_s18, 3 }
  0x5d   : > { %s227_s30 = scalar_lea.sflag (!%p1492_p11), [#allocation9], %s226_s18  ;;  %s230_s6 = scalar_lea.vmem (!%p1492_p11), [#allocation8], %s789_s19 }
  0x63   : > { %1099 = dma.done.wait (%p1493_p13), %s227_s30, 128  }
  0x64   : > { %1101 = vsyncadd (%p1493_p13), %s227_s30, 4294967168  ;;  %p1494_p3 = scmp.eq.s32.totalorder %s1193_s4, 0 }
  0x66   : > { %1103 = dma.done.wait (%p1494_p3), [#allocation11], 1408   ;;  %p1495_p7 = pmov %p1494_p3 }
  0x67   : > { %p1496_p8 = scmp.ne.s32.totalorder %s1193_s4, 0 }
  0x68   : > { %1105 = vsyncadd (%p1495_p7), [#allocation11], 4294965888  ;;  %v1135_v0 = vmov (!%p1496_p8), 0.0  }
  0x69   : > { %265 = sbr.rel (%p1496_p8) target bundleno = 112 (0x70), region = 56  ;;  %266 = vst [vmem:[#allocation3] sm:$0x1] (!%p1496_p8), %v1135_v0  ;;  %267 = vst [vmem:[#allocation4] sm:$0x1] (!%p1496_p8), %v1135_v0 }
  0x70 PF: > { %v956_v1 = vld [vmem:[#allocation10] sm:$0xff]   ;;  %v1136_v2 = vmov 0.0   ;;  %v957_v3 = vld [vmem:[#allocation10 + $0x8] sm:$0xff]   ;;  %vm1137_vm0 = vmmov 0   ;;  %s1344_s24 = sshll.u32 %s1193_s4, 4  ;;  %v958_v4 = vld [vmem:[#allocation10 + $0x10] sm:$0xff]  }
  0x71   : > { %838 = vmatprep.subr.bf16.mxu0 %v1136_v2  ;;  %844 = vmatprep.mubr.msk.bf16.mxu0 %vm1137_vm0, %v1136_v2  ;;  %s351_s25 = ssub.s32 48, %s1344_s24  ;;  %s355_s14 = scvt.s32.f32 %s1344_s24  ;;  %v959_v5 = vld [vmem:[%s230_s6] sm:$0xff]   ;;  %vm299_vm1 = vcmask 392192   ;;  %v377_v22 = vld [vmem:[#allocation3] sm:$0x1] }
  0x72   : > { %839 = vmatpush3.bf16.msra.mxu0 %v956_v1  ;;  %p352_p10 = scmp.lt.s32.totalorder %s351_s25, 16  ;;  %s346_s26 = sshra.s32 %s1344_s24, 4  ;;  %v388_v39 = vld [vmem:[#allocation4] sm:$0x1] }
  0x73   : > { %840 = vmatprep.subr.bf16.mxu0 %v1136_v2  ;;  %s799_s29 = sshll.u32 %s346_s26, 3  ;;  %p800_p1 = scmp.ne.s32.totalorder %s1193_s4, 2 }
  0x74   : > { %s1502_s25 = smov (!%p352_p10, %s351_s25), 16  ;;  %s349_s23 = scalar_lea.vmem [#allocation2], %s799_s29  ;;  %v1363_v45 = vld [vmem:[%s1482_s3] ss:$0 sm:$0xff] (!%p800_p1)  ;;  %v1368_v46 = vld [vmem:[%s1482_s3 + $0x1] ss:$0 sm:$0xff] (!%p800_p1) }
  0x75   : > { %s1348_s15 = scvt.s32.f32 %s1502_s25  ;;  %v1373_v47 = vld [vmem:[%s1482_s3 + $0x2] ss:$0 sm:$0xff] (!%p800_p1)  ;;  %v1378_v48 = vld [vmem:[%s1482_s3 + $0x3] ss:$0 sm:$0xff] (!%p800_p1)  ;;  %v1383_v49 = vld [vmem:[%s1482_s3 + $0x4] ss:$0 sm:$0xff] (!%p800_p1) }
  0x76   : > { %841 = vmatpush3.bf16.msra.mxu0 %v957_v3  ;;  %s1385_s24 = sld [smem:[#allocation7]] (!%p800_p1)  ;;  %v1138_v53 = vmov (!%p800_p1), 0.0   ;;  %s1391_s25 = smov (!%p800_p1), 0  }
  0x77   : > { %842 = vmatprep.subr.bf16.mxu0 %v1136_v2  ;;  %s379_s20 = sadd.f32 %s355_s14, %s1348_s15  ;;  %v363_v9 = vstv %s1348_s15  ;;  %s391_s8 = smul.f32 %s355_s14, %s1348_s15  ;;  %415 = vst [vmem:[#allocation5] sm:$0x1] (!%p800_p1), %v1138_v53  ;;  %416 = vst [vmem:[#allocation6] sm:$0x1] (!%p800_p1), %v1138_v53 }
  0x79   : > { %v380_v6 = vstv %s379_s20 }
  0x7a   : > { %843 = vmatpush3.bf16.msra.mxu0 %v958_v4  ;;  %960 = vrcp.f32 %v380_v6 }
  0x7b   : > { %962 = vrcp.f32 %v363_v9 }
  0x7d   : > { %845 = vmatmul.mubr.msk.bf16.vlgmr.msra.gmra.mrb[0].mxu0 %vm299_vm1, %v959_v5 }
  0x84   : > { %v961_v7 = vpop.eup %960 }
  0x85   : > { %868 = vpush %v961_v7  ;;  %v963_v20 = vpop.eup %962 }
  0xb6   : > { %s869_s7 = spop %868 }
  0xb7   : > { %s383_s27 = smul.f32 %s869_s7, %s1348_s15 }
  0xb8   : > { %s395_s9 = smul.f32 %s869_s7, %s391_s8 }
  0xb9   : > { %v384_v24 = vstv %s383_s27 }
  0xba   : > { %v396_v40 = vstv %s395_s9 }
 0x150   : > { %v337_v8 = vpop.f32.mrb[0].mxu0 }
 0x151   : > { %v846_v10 = vpop.f32.mrb[1].mxu0 }
 0x152   : > { %v340_v11 = vpop.f32.mrb[2].mxu0 }
 0x153   : > { %v345_v12 = vpack.c.bf16 %v340_v11, %v337_v8  ;;  %v356_v13 = vadd.f32 %v340_v11, %v337_v8  ;;  %v847_v14 = vpop.f32.mrb[3].mxu0 }
 0x155   : > { %350 = vst [vmem:[%s349_s23] sm:$0xff] %v345_v12  ;;  %v357_v15 = vrot.slane %v356_v13, 4 }
 0x157   : > { %v358_v16 = vadd.f32 %v357_v15, %v356_v13 }
 0x159   : > { %v359_v17 = vrot.slane %v358_v16, 2 }
 0x15b   : > { %v360_v18 = vadd.f32 %v359_v17, %v358_v16 }
 0x15d   : > { %v361_v19 = vrot.slane %v360_v18, 1 }
 0x15f   : > { %v362_v21 = vadd.f32 %v361_v19, %v360_v18 }
 0x161   : > { %v365_v23 = vmul.f32 %v963_v20, %v362_v21 }
 0x163   : > { %v366_v25 = vsub.f32 %v337_v8, %v365_v23  ;;  %v367_v26 = vsub.f32 %v340_v11, %v365_v23  ;;  %v378_v27 = vsub.f32 %v365_v23, %v377_v22 }
 0x165   : > { %v368_v28 = vmul.f32 %v366_v25, %v366_v25  ;;  %v369_v29 = vmul.f32 %v367_v26, %v367_v26  ;;  %v385_v30 = vmul.f32 %v384_v24, %v378_v27  ;;  %v390_v38 = vmul.f32 %v378_v27, %v378_v27 }
 0x167   : > { %v370_v31 = vadd.f32 %v369_v29, %v368_v28  ;;  %v386_v32 = vadd.f32 %v385_v30, %v377_v22  ;;  %v397_v43 = vmul.f32 %v396_v40, %v390_v38 }
 0x169   : > { %v371_v33 = vrot.slane %v370_v31, 4  ;;  %387 = vst [vmem:[#allocation3] sm:$0x1] %v386_v32 }
 0x16b   : > { %v372_v34 = vadd.f32 %v371_v33, %v370_v31 }
 0x16d   : > { %v373_v35 = vrot.slane %v372_v34, 2 }
 0x16f   : > { %v374_v36 = vadd.f32 %v373_v35, %v372_v34 }
 0x170   : > { %v1387_v50 = vld [vmem:[#allocation3] ss:$0 sm:$0xff] (!%p800_p1) }
 0x171   : > { %v375_v37 = vrot.slane %v374_v36, 1 }
 0x173   : > { %v376_v41 = vadd.f32 %v375_v37, %v374_v36  ;;  %403 = sbr.rel (%p800_p1) target bundleno = 912 (0x390), region = 60 }
 0x175   : > { %v389_v42 = vadd.f32 %v388_v39, %v376_v41 }
 0x177   : > { %v398_v44 = vadd.f32 %v397_v43, %v389_v42 }
 0x179   : > { %399 = vst [vmem:[#allocation4] sm:$0x1] %v398_v44 }
 0x180   : > { %v411_v51 = vld [vmem:[#allocation4] sm:$0x1] }
 0x181   : > { %v412_v52 = vmul.f32 0.020833334, %v411_v51 }
 0x183   : > { %v413_v54 = vadd.f32 1e-05, %v412_v52 }
 0x185   : > { %964 = vrsqrt.f32 %v413_v54 }
 0x18f   : > { %v1389_v55 = vpop.eup %964 }
 0x190 LB: >> { %v966_v56 = vld [vmem:[#allocation12] sm:$0xff]   ;;  %v1139_v57 = vmov 0.0   ;;  %v967_v58 = vld [vmem:[#allocation12 + $0x8] sm:$0xff]   ;;  %vm1140_vm2 = vmmov 0   ;;  %s1397_s14 = sshll.u32 %s1124_s25, 4  ;;  %v446_v59 = vlaneseq  ;;  %v968_v60 = vld [vmem:[#allocation12 + $0x10] sm:$0xff]   ;;  %s1124_s25 = sphi %s1391_s25, %s422_s25  }
 0x191   : >> { %848 = vmatprep.subr.bf16.mxu0 %v1139_v57  ;;  %864 = vmatprep.mubr.msk.bf16.mxu0 %vm1140_vm2, %v1139_v57  ;;  %s424_s15 = sshra.s32 %s1397_s14, 4  ;;  %s569_s26 = ssub.s32 48, %s1397_s14  ;;  %v969_v2 = vld [vmem:[#allocation12 + $0x18] sm:$0xff]   ;;  %v970_v8 = vld [vmem:[#allocation12 + $0x20] sm:$0xff]   ;;  %v971_v12 = vld [vmem:[#allocation12 + $0x28] sm:$0xff]  }
 0x192   : >> { %849 = vmatpush3.bf16.msra.mxu0 %v966_v56  ;;  %s1400_s20 = sshll.u32 %s424_s15, 3  ;;  %v1402_v61 = vshrl.u32 %v446_v59, 7  ;;  %p570_p4 = scmp.lt.s32.totalorder %s569_s26, 16  ;;  %v972_v15 = vld [vmem:[#allocation12 + $0x30] sm:$0xff]   ;;  %v973_v18 = vld [vmem:[#allocation12 + $0x38] sm:$0xff]  }
 0x193   : >> { %850 = vmatprep.subr.bf16.mxu0 %v1139_v57  ;;  %s427_s29 = scalar_lea.vmem [#allocation2], %s1400_s20  ;;  %s573_s23 = scvt.s32.f32 %s1397_s14  ;;  %v595_v35 = vld [vmem:[#allocation5] sm:$0x1]  ;;  %v606_v59 = vld [vmem:[#allocation6] sm:$0x1] }
 0x194   : >> { %v428_v62 = vld [vmem:[%s427_s29] sm:$0xff]  ;;  %v448_v1 = vsub.s32 0, %v1402_v61  ;;  %s1504_s26 = smov (!%p570_p4, %s569_s26), 16  ;;  %s422_s25 = sadd.s32 1, %s1124_s25  }
 0x195   : >> { %v429_v63 = vunpack.c.l.bf16 %v428_v62  ;;  %v430_v0 = vunpack.c.h.bf16 %v428_v62  ;;  %s1412_s7 = scvt.s32.f32 %s1504_s26  ;;  %p419_p5 = scmp.ge.s32.totalorder %s422_s25, 3  }
 0x196   : >> { %851 = vmatpush3.bf16.msra.mxu0 %v967_v58  ;;  %v449_v7 = vrot.slane %v1389_v55, %v448_v1  ;;  %s1438_s12 = smov (%p419_p5), 0  }
 0x197   : >> { %852 = vmatprep.subr.bf16.mxu0 %v1139_v57  ;;  %v437_v3 = vsub.f32 %v429_v63, %v1387_v50  ;;  %v438_v4 = vsub.f32 %v430_v0, %v1387_v50  ;;  %s597_s27 = sadd.f32 %s573_s23, %s1412_s7  ;;  %v581_v22 = vstv %s1412_s7  ;;  %s609_s28 = smul.f32 %s573_s23, %s1412_s7 }
 0x199   : >> { %v443_v5 = vmul.f32 %v1363_v45, %v437_v3  ;;  %v444_v6 = vmul.f32 %v1363_v45, %v438_v4  ;;  %v598_v9 = vstv %s597_s27 }
 0x19a   : >> { %853 = vmatpush3.bf16.msra.mxu0 %v968_v60  ;;  %974 = vrcp.f32 %v598_v9 }
 0x19b   : >> { %854 = vmatprep.subr.bf16.mxu0 %v1139_v57  ;;  %v451_v10 = vmul.f32 %v449_v7, %v443_v5  ;;  %v452_v11 = vmul.f32 %v449_v7, %v444_v6  ;;  %976 = vrcp.f32 %v581_v22 }
 0x19d   : >> { %v457_v13 = vadd.f32 %v1368_v46, %v451_v10  ;;  %v458_v14 = vadd.f32 %v1368_v46, %v452_v11 }
 0x19e   : >> { %855 = vmatpush3.bf16.msra.mxu0 %v969_v2 }
 0x19f   : >> { %856 = vmatprep.subr.bf16.mxu0 %v1139_v57  ;;  %v459_v16 = vmax.f32 %v457_v13, 0.0  ;;  %v460_v17 = vmax.f32 %v458_v14, 0.0 }
 0x1a1   : >> { %v461_v20 = vpack.c.bf16 %v460_v17, %v459_v16 }
 0x1a2   : >> { %857 = vmatpush3.bf16.msra.mxu0 %v970_v8 }
 0x1a3   : >> { %858 = vmatprep.subr.bf16.mxu0 %v1139_v57 }
 0x1a4   : >> { %v975_v19 = vpop.eup %974 }
 0x1a5   : >> { %870 = vpush %v975_v19  ;;  %v977_v33 = vpop.eup %976 }
 0x1a6   : >> { %859 = vmatpush3.bf16.msra.mxu0 %v971_v12 }
 0x1a7   : >> { %860 = vmatprep.subr.bf16.mxu0 %v1139_v57 }
 0x1aa   : >> { %861 = vmatpush3.bf16.msra.mxu0 %v972_v15 }
 0x1ab   : >> { %862 = vmatprep.subr.bf16.mxu0 %v1139_v57 }
 0x1ae   : >> { %863 = vmatpush3.bf16.msra.mxu0 %v973_v18 }
 0x1b1   : >> { %865 = vmatmul.mubr.bf16.vlgmr.msra.gmra.mrb[0].mxu0 %v461_v20 }
 0x1d6   : >> { %s871_s8 = spop %870 }
 0x1d7   : >> { %s601_s9 = smul.f32 %s871_s8, %s1412_s7 }
 0x1d8   : >> { %s613_s11 = smul.f32 %s871_s8, %s609_s28 }
 0x1d9   : >> { %v602_v37 = vstv %s601_s9 }
 0x1da   : >> { %v614_v60 = vstv %s613_s11 }
 0x284   : >> { %v560_v21 = vpop.f32.mrb[0].mxu0 }
 0x285   : >> { %v866_v23 = vpop.f32.mrb[1].mxu0 }
 0x286   : >> { %v563_v24 = vpop.f32.mrb[2].mxu0 }
 0x287   : >> { %v567_v25 = vpack.c.bf16 %v563_v24, %v560_v21  ;;  %v574_v26 = vadd.f32 %v563_v24, %v560_v21  ;;  %v867_v27 = vpop.f32.mrb[3].mxu0 }
 0x289   : >> { %568 = vst [vmem:[%s427_s29] sm:$0xff] %v567_v25  ;;  %v575_v28 = vrot.slane %v574_v26, 4 }
 0x28b   : >> { %v576_v29 = vadd.f32 %v575_v28, %v574_v26 }
 0x28d   : >> { %v577_v30 = vrot.slane %v576_v29, 2 }
 0x28f   : >> { %v578_v31 = vadd.f32 %v577_v30, %v576_v29 }
 0x291   : >> { %v579_v32 = vrot.slane %v578_v31, 1 }
 0x293   : >> { %v580_v34 = vadd.f32 %v579_v32, %v578_v31 }
 0x295   : >> { %v583_v36 = vmul.f32 %v977_v33, %v580_v34 }
 0x297   : >> { %v584_v38 = vsub.f32 %v560_v21, %v583_v36  ;;  %v585_v39 = vsub.f32 %v563_v24, %v583_v36  ;;  %v596_v40 = vsub.f32 %v583_v36, %v595_v35 }
 0x299   : >> { %v586_v41 = vmul.f32 %v584_v38, %v584_v38  ;;  %v587_v42 = vmul.f32 %v585_v39, %v585_v39  ;;  %v603_v43 = vmul.f32 %v602_v37, %v596_v40  ;;  %v608_v58 = vmul.f32 %v596_v40, %v596_v40 }
 0x29b   : >> { %v588_v44 = vadd.f32 %v587_v42, %v586_v41  ;;  %v604_v51 = vadd.f32 %v603_v43, %v595_v35  ;;  %v615_v0 = vmul.f32 %v614_v60, %v608_v58 }
 0x29d   : >> { %v589_v52 = vrot.slane %v588_v44, 4  ;;  %605 = vst [vmem:[#allocation5] sm:$0x1] %v604_v51 }
 0x29f   : >> { %v590_v53 = vadd.f32 %v589_v52, %v588_v44 }
 0x2a1   : >> { %v591_v54 = vrot.slane %v590_v53, 2 }
 0x2a3   : >> { %v592_v56 = vadd.f32 %v591_v54, %v590_v53 }
 0x2a4   : > { %v1434_v3 = vld [vmem:[#allocation5] ss:$0 sm:$0xff] (%p419_p5) }
 0x2a5   : >> { %v593_v57 = vrot.slane %v592_v56, 1 }
 0x2a7   : >> { %v594_v62 = vadd.f32 %v593_v57, %v592_v56  ;;  %421 = sbr.rel (!%p419_p5) target bundleno = 400 (0x190), region = 110 }
 0x2a9   : >> { %v607_v63 = vadd.f32 %v606_v59, %v594_v62 }
 0x2ab   : >> { %v616_v2 = vadd.f32 %v615_v0, %v607_v63 }
 0x2ad   : >> { %617 = vst [vmem:[#allocation6] sm:$0x1] %v616_v2 }
 0x2b4   : > { %v619_v4 = vld [vmem:[#allocation6] sm:$0x1] }
 0x2b5   : > { %v620_v5 = vmul.f32 0.020833334, %v619_v4 }
 0x2b7   : > { %v621_v6 = vadd.f32 1e-05, %v620_v5 }
 0x2b9   : > { %978 = vrsqrt.f32 %v621_v6 }
 0x2c3   : > { %v1436_v7 = vpop.eup %978 }
 0x2c4 LB: >> { %s814_s16 = sshll.u32 %s1128_s12, 4  ;;  %v655_v8 = vrot.slane %v1436_v7, %v448_v1  ;;  %v677_v20 = vstv %s1385_s24  ;;  %vm701_vm3 = vcmask 7168   ;;  %s628_s12 = sadd.s32 1, %s1128_s12   ;;  %s1128_s12 = sphi %s1438_s12, %s628_s12  }
 0x2c5   : >> { %s630_s17 = sshra.s32 %s814_s16, 4  ;;  %s700_s6 = scalar_lea.vmem %s1484_s5, %s814_s16 }
 0x2c6   : >> { %s815_s18 = sshll.u32 %s630_s17, 3  ;;  %p625_p6 = scmp.ge.s32.totalorder %s628_s12, 3  }
 0x2c7   : >> { %s633_s19 = scalar_lea.vmem [#allocation2], %s815_s18 }
 0x2c8   : >> { %v634_v45 = vld [vmem:[%s633_s19] sm:$0xff] }
 0x2c9   : >> { %v635_v46 = vunpack.c.l.bf16 %v634_v45  ;;  %v636_v50 = vunpack.c.h.bf16 %v634_v45 }
 0x2cb   : >> { %v643_v55 = vsub.f32 %v635_v46, %v1434_v3  ;;  %v644_v9 = vsub.f32 %v636_v50, %v1434_v3 }
 0x2cd   : >> { %v649_v10 = vmul.f32 %v1373_v47, %v643_v55  ;;  %v650_v11 = vmul.f32 %v1373_v47, %v644_v9 }
 0x2cf   : >> { %v657_v12 = vmul.f32 %v655_v8, %v649_v10  ;;  %v658_v13 = vmul.f32 %v655_v8, %v650_v11 }
 0x2d1   : >> { %v663_v14 = vadd.f32 %v1378_v48, %v657_v12  ;;  %v664_v15 = vadd.f32 %v1378_v48, %v658_v13 }
 0x2d3   : >> { %v665_v16 = vmax.f32 %v663_v14, 0.0  ;;  %v666_v17 = vmax.f32 %v664_v15, 0.0 }
 0x2d5   : >> { %v671_v18 = vmul.f32 %v1383_v49, %v665_v16  ;;  %v672_v19 = vmul.f32 %v1383_v49, %v666_v17 }
 0x2d7   : >> { %673 = vadd.xlane.f32.xlu0 %v671_v18 }
 0x2db   : >> { %675 = vadd.xlane.f32.xlu0 %v672_v19 }
 0x364   : >> { %v674_v21 = vpop.xlane.xlu0 %673 }
 0x365   : >> { %v678_v22 = vadd.f32 %v677_v20, %v674_v21 }
 0x367   : >> { %v820_v23 = vadd.f32 13.815511, %v678_v22  ;;  %v680_v38 = vmax.f32 %v678_v22, -13.815511 }
 0x368   : >> { %v676_v24 = vpop.xlane.xlu0 %675 }
 0x369   : >> { %v684_v25 = vand.u32 2147483647, %v820_v23  ;;  %v679_v26 = vadd.f32 %v677_v20, %v676_v24 }
 0x36b   : >> { %v686_v27 = vsub.f32 0.0, %v684_v25  ;;  %v821_v28 = vadd.f32 13.815511, %v679_v26  ;;  %v681_v42 = vmax.f32 %v679_v26, -13.815511 }
 0x36d   : >> { %v688_v29 = vmul.f32 1.442695, %v686_v27  ;;  %v685_v30 = vand.u32 2147483647, %v821_v28 }
 0x36f   : >> { %980 = vpow2.f32 %v688_v29  ;;  %v687_v31 = vsub.f32 0.0, %v685_v30 }
 0x371   : >> { %v690_v32 = vmul.f32 1.442695, %v687_v31 }
 0x373   : >> { %982 = vpow2.f32 %v690_v32 }
 0x379   : >> { %v981_v33 = vpop.eup %980 }
 0x37a   : >> { %v692_v34 = vadd.f32 1.0, %v981_v33 }
 0x37c   : >> { %984 = vlog2.f32 %v692_v34 }
 0x37d   : >> { %v983_v35 = vpop.eup %982 }
 0x37e   : >> { %v693_v36 = vadd.f32 1.0, %v983_v35 }
 0x380   : >> { %986 = vlog2.f32 %v693_v36 }
 0x386   : >> { %v985_v37 = vpop.eup %984 }
 0x387   : >> { %v695_v39 = vmul.f32 0.6931472, %v985_v37 }
 0x389   : >> { %v698_v40 = vadd.f32 %v695_v39, %v680_v38  ;;  %627 = sbr.rel (!%p625_p6) target bundleno = 708 (0x2c4), region = 121 }
 0x38a   : >> { %v987_v41 = vpop.eup %986 }
 0x38b   : >> { %702 = vst.msk [vmem:[%s700_s6] sm:$0xff] %vm701_vm3, %v698_v40  ;;  %v697_v43 = vmul.f32 0.6931472, %v987_v41 }
 0x38d   : >> { %v699_v44 = vadd.f32 %v697_v43, %v681_v42 }
 0x38f   : >> { %703 = vst.msk [vmem:[%s700_s6 + $0x8] sm:$0xff] %vm701_vm3, %v699_v44 }
 0x390 PF: > { %p17_p9 = scmp.ge.s32.totalorder %s1274_s10, 5   ;;  %s1497_s20 = smov %s1112_s21 }
 0x391   : > { %s1498_s21 = smov %s1116_s22  ;;  %s1499_s22 = smov %s1285_s13 }
 0x392   : > { %s1500_s23 = smov %s1274_s10  ;;  %19 = sbr.rel (!%p17_p9) target bundleno = 6 (0x6), region = 132 }
 0x399   :  { %715 = vsyncpa [#allocation9], 1 }
 0x39a   :  { %717 = vsyncpa [#allocation9 + $0x1], 1 }
 0x39b   :  { %718 = vsyncpa [#allocation11], 1 }

</bundles_post_ra>
